<compile_context>
chip_gen: v7x
topology: tpu7x:2x2x1
jax: 0.10.0
libtpu: 0.0.40
codegen_flags: <defaults>
</compile_context>

<pallas_src>
import jax
import jax.numpy as jnp
from jax.experimental import pallas as pl
from jax.experimental.pallas import tpu as pltpu

MEMORY_INPUT = 28 * 28          # 784
MEMORY_REPRESENTATION = 64


def _round_up(n, m):
    return ((n + m - 1) // m) * m


def mem_encoder_kernel(x_ref,
                       w1_ref, b1_ref,
                       w23_ref, b23_ref,
                       w4_ref, b4_ref,
                       out_ref):
    """Fused forward pass on one batch tile:
         h  = ReLU(x @ W1 + b1)            (784 -> 64)
         d  = ReLU(h @ W23 + b23)          (64 -> 64, folded W2@W3)
         y  = d @ W4 + b4                  (64 -> 784)
       Matmuls hit the MXU with f32 accumulation; bias add + ReLU on the VPU."""
    cdt = w1_ref.dtype   # compute/storage dtype of operands (f32 or bf16)

    x = x_ref[...]
    h = jnp.dot(x, w1_ref[...], preferred_element_type=jnp.float32) + b1_ref[...]
    h = jnp.maximum(h, 0.0).astype(cdt)

    d = jnp.dot(h, w23_ref[...], preferred_element_type=jnp.float32) + b23_ref[...]
    d = jnp.maximum(d, 0.0).astype(cdt)

    y = jnp.dot(d, w4_ref[...], preferred_element_type=jnp.float32) + b4_ref[...]
    out_ref[...] = y.astype(out_ref.dtype)


def memory_encoder_forward(x, params, *, block_b=512, io_dtype=None):
    """x: [B, 784].  params: dict of (in,out) weights + (1,out) biases (f32).

    block_b:  batch rows per grid step (tile); multiple of 16 is enforced.
    io_dtype: dtype for x / weights / output (default: x.dtype). Use
              jnp.bfloat16 to halve HBM traffic; accumulation stays f32.
    """
    B, F_in = x.shape
    assert F_in == MEMORY_INPUT
    io_dtype = x.dtype if io_dtype is None else io_dtype

    # --- fold the two middle linears (no ReLU between W2 and W3) ------------
    w1 = params["w1"].astype(io_dtype)
    w23 = (params["w2"] @ params["w3"]).astype(io_dtype)
    w4 = params["w4"].astype(io_dtype)
    b1 = params["b1"].astype(jnp.float32)
    b23 = (params["b2"] @ params["w3"] + params["b3"]).astype(jnp.float32)
    b4 = params["b4"].astype(jnp.float32)

    # --- batch tiling (sublane quantum 16 covers both f32 and bf16) ---------
    tb = max(16, min(_round_up(block_b, 16), _round_up(B, 16)))
    Bp = _round_up(B, tb)

    x_io = x.astype(io_dtype)
    if Bp != B:
        x_io = jnp.pad(x_io, ((0, Bp - B), (0, 0)))

    grid = (Bp // tb,)

    # Weights / biases: constant block index -> VMEM-resident across grid steps.
    resident = lambda arr: pl.BlockSpec(arr.shape, lambda i: (0, 0))

    out = pl.pallas_call(
        mem_encoder_kernel,
        out_shape=jax.ShapeDtypeStruct((Bp, MEMORY_INPUT), io_dtype),
        grid=grid,
        in_specs=[
            pl.BlockSpec((tb, MEMORY_INPUT), lambda i: (i, 0)),   # x tile
            resident(w1), resident(b1),
            resident(w23), resident(b23),
            resident(w4), resident(b4),
        ],
        out_specs=pl.BlockSpec((tb, MEMORY_INPUT), lambda i: (i, 0)),
        compiler_params=pltpu.CompilerParams(
            dimension_semantics=("parallel",)),   # lets v7x shard tiles over 2 TCs
    )(x_io, w1, b1, w23, b23, w4, b4)

    return out[:B]


def init_params(key):
    """Deterministic init matching PyTorch nn.Linear default:
       U(-1/sqrt(fan_in), 1/sqrt(fan_in)) for both weight and bias.
       Weights are stored transposed: (in_features, out_features)."""
    dims = [
        ("w1", "b1", MEMORY_INPUT, MEMORY_REPRESENTATION),
        ("w2", "b2", MEMORY_REPRESENTATION, MEMORY_REPRESENTATION),
        ("w3", "b3", MEMORY_REPRESENTATION, MEMORY_REPRESENTATION),
        ("w4", "b4", MEMORY_REPRESENTATION, MEMORY_INPUT),
    ]
    params = {}
    for wname, bname, fan_in, fan_out in dims:
        key, kw, kb = jax.random.split(key, 3)
        bound = 1.0 / jnp.sqrt(float(fan_in))
        params[wname] = jax.random.uniform(
            kw, (fan_in, fan_out), jnp.float32, minval=-bound, maxval=bound)
        # bias kept 2D (1, fan_out) for clean TPU layout / broadcasting
        params[bname] = jax.random.uniform(
            kb, (1, fan_out), jnp.float32, minval=-bound, maxval=bound)
    return params


def reference_forward(x, params):
    """Plain-JAX reference of the original (unfolded) forward pass."""
    h = jnp.maximum(x @ params["w1"] + params["b1"], 0.0)
    enc = h @ params["w2"] + params["b2"]
    d = jnp.maximum(enc @ params["w3"] + params["b3"], 0.0)
    return d @ params["w4"] + params["b4"]


if __name__ == "__main__":
    key = jax.random.PRNGKey(0)
    key, kx = jax.random.split(key)

    B = 32  # small demo batch; wrapper pads/tiles arbitrary B
    x = jax.random.normal(kx, (B, MEMORY_INPUT), jnp.float32)
    params = init_params(key)

    # f32 I/O path (exact semantics up to fp32 rounding from the W2@W3 fold)
    out = jax.block_until_ready(memory_encoder_forward(x, params))
    ref = reference_forward(x, params)
    assert out.shape == (B, MEMORY_INPUT)
    assert out.dtype == jnp.float32
    assert jnp.allclose(out, ref, atol=1e-3, rtol=1e-3)

    # bf16 I/O path (halves HBM traffic); looser tolerance due to bf16 rounding
    out_bf16 = jax.block_until_ready(
        memory_encoder_forward(x, params, io_dtype=jnp.bfloat16))
    assert out_bf16.shape == (B, MEMORY_INPUT)
    assert out_bf16.dtype == jnp.bfloat16
    assert jnp.allclose(out_bf16.astype(jnp.float32), ref, atol=1.5e-1, rtol=1.5e-1)

    print("KERNEL_OK")
</pallas_src>

<mosaic_0001>
module attributes {stable_mosaic.version = 11 : i64} {
  func.func @mem_encoder_kernel(%arg0: i32, %arg1: memref<32x784xf32, #tpu.memory_space<vmem>>, %arg2: memref<784x64xf32, #tpu.memory_space<vmem>>, %arg3: memref<1x64xf32, #tpu.memory_space<vmem>>, %arg4: memref<64x64xf32, #tpu.memory_space<vmem>>, %arg5: memref<1x64xf32, #tpu.memory_space<vmem>>, %arg6: memref<64x784xf32, #tpu.memory_space<vmem>>, %arg7: memref<1x784xf32, #tpu.memory_space<vmem>>, %arg8: memref<32x784xf32, #tpu.memory_space<vmem>>) attributes {dimension_semantics = [#tpu.dimension_semantics<parallel>], iteration_bounds = array<i64: 1>, scalar_prefetch = 0 : i64, scratch_operands = 0 : i64, tpu.core_type = #tpu.core_type<tc>, window_params = [{transform_indices = @transform_0, window_bounds = array<i64: 32, 784>}, {pipeline_mode = #tpu.pipeline_mode<synchronous>, transform_indices = @transform_1, window_bounds = array<i64: 784, 64>}, {pipeline_mode = #tpu.pipeline_mode<synchronous>, transform_indices = @transform_2, window_bounds = array<i64: 1, 64>}, {pipeline_mode = #tpu.pipeline_mode<synchronous>, transform_indices = @transform_3, window_bounds = array<i64: 64, 64>}, {pipeline_mode = #tpu.pipeline_mode<synchronous>, transform_indices = @transform_4, window_bounds = array<i64: 1, 64>}, {pipeline_mode = #tpu.pipeline_mode<synchronous>, transform_indices = @transform_5, window_bounds = array<i64: 64, 784>}, {pipeline_mode = #tpu.pipeline_mode<synchronous>, transform_indices = @transform_6, window_bounds = array<i64: 1, 784>}, {transform_indices = @transform_7, window_bounds = array<i64: 32, 784>}]} {
    %c0 = arith.constant 0 : index
    %c0_0 = arith.constant 0 : index
    %0 = vector.load %arg1[%c0, %c0_0] : memref<32x784xf32, #tpu.memory_space<vmem>>, vector<32x784xf32>
    %c0_1 = arith.constant 0 : index
    %c0_2 = arith.constant 0 : index
    %1 = vector.load %arg2[%c0_1, %c0_2] : memref<784x64xf32, #tpu.memory_space<vmem>>, vector<784x64xf32>
    %cst = arith.constant dense<0.000000e+00> : vector<32x64xf32>
    %2 = tpu.matmul %0, %1, %cst {dimension_numbers = #tpu.dot_dimension_numbers<[1], [0], [0], [1], [0, 0, 1, 1], [], []>} : vector<32x784xf32>, vector<784x64xf32>, vector<32x64xf32> -> vector<32x64xf32>
    %c0_3 = arith.constant 0 : index
    %c0_4 = arith.constant 0 : index
    %3 = vector.load %arg3[%c0_3, %c0_4] : memref<1x64xf32, #tpu.memory_space<vmem>>, vector<1x64xf32>
    %4 = vector.broadcast %3 : vector<1x64xf32> to vector<32x64xf32>
    %5 = arith.addf %2, %4 : vector<32x64xf32>
    %cst_5 = arith.constant 0.000000e+00 : f32
    %6 = vector.broadcast %cst_5 : f32 to vector<32x64xf32>
    %7 = arith.maximumf %5, %6 : vector<32x64xf32>
    %c0_6 = arith.constant 0 : index
    %c0_7 = arith.constant 0 : index
    %8 = vector.load %arg4[%c0_6, %c0_7] : memref<64x64xf32, #tpu.memory_space<vmem>>, vector<64x64xf32>
    %cst_8 = arith.constant dense<0.000000e+00> : vector<32x64xf32>
    %9 = tpu.matmul %7, %8, %cst_8 {dimension_numbers = #tpu.dot_dimension_numbers<[1], [0], [0], [1], [0, 0, 1, 1], [], []>} : vector<32x64xf32>, vector<64x64xf32>, vector<32x64xf32> -> vector<32x64xf32>
    %c0_9 = arith.constant 0 : index
    %c0_10 = arith.constant 0 : index
    %10 = vector.load %arg5[%c0_9, %c0_10] : memref<1x64xf32, #tpu.memory_space<vmem>>, vector<1x64xf32>
    %11 = vector.broadcast %10 : vector<1x64xf32> to vector<32x64xf32>
    %12 = arith.addf %9, %11 : vector<32x64xf32>
    %cst_11 = arith.constant 0.000000e+00 : f32
    %13 = vector.broadcast %cst_11 : f32 to vector<32x64xf32>
    %14 = arith.maximumf %12, %13 : vector<32x64xf32>
    %c0_12 = arith.constant 0 : index
    %c0_13 = arith.constant 0 : index
    %15 = vector.load %arg6[%c0_12, %c0_13] : memref<64x784xf32, #tpu.memory_space<vmem>>, vector<64x784xf32>
    %cst_14 = arith.constant dense<0.000000e+00> : vector<32x784xf32>
    %16 = tpu.matmul %14, %15, %cst_14 {dimension_numbers = #tpu.dot_dimension_numbers<[1], [0], [0], [1], [0, 0, 1, 1], [], []>} : vector<32x64xf32>, vector<64x784xf32>, vector<32x784xf32> -> vector<32x784xf32>
    %c0_15 = arith.constant 0 : index
    %c0_16 = arith.constant 0 : index
    %17 = vector.load %arg7[%c0_15, %c0_16] : memref<1x784xf32, #tpu.memory_space<vmem>>, vector<1x784xf32>
    %18 = vector.broadcast %17 : vector<1x784xf32> to vector<32x784xf32>
    %19 = arith.addf %16, %18 : vector<32x784xf32>
    %c0_17 = arith.constant 0 : index
    %c0_18 = arith.constant 0 : index
    %20 = vector.load %arg8[%c0_17, %c0_18] : memref<32x784xf32, #tpu.memory_space<vmem>>, vector<32x784xf32>
    tpu.vector_store %arg8[%c0_17, %c0_18], %19 {strides = array<i32>} : memref<32x784xf32, #tpu.memory_space<vmem>>, vector<32x784xf32>,
    return
  }
  func.func @transform_0(%arg0: i32) -> (i32, i32) {
    %c0_i32 = arith.constant 0 : i32
    %c0_i32_0 = arith.constant 0 : i32
    return %arg0, %c0_i32 : i32, i32
  }
  func.func @transform_1(%arg0: i32) -> (i32, i32) {
    %c0_i32 = arith.constant 0 : i32
    %c0_i32_0 = arith.constant 0 : i32
    %c0_i32_1 = arith.constant 0 : i32
    return %c0_i32, %c0_i32_0 : i32, i32
  }
  func.func @transform_2(%arg0: i32) -> (i32, i32) {
    %c0_i32 = arith.constant 0 : i32
    %c0_i32_0 = arith.constant 0 : i32
    %c0_i32_1 = arith.constant 0 : i32
    return %c0_i32, %c0_i32_0 : i32, i32
  }
  func.func @transform_3(%arg0: i32) -> (i32, i32) {
    %c0_i32 = arith.constant 0 : i32
    %c0_i32_0 = arith.constant 0 : i32
    %c0_i32_1 = arith.constant 0 : i32
    return %c0_i32, %c0_i32_0 : i32, i32
  }
  func.func @transform_4(%arg0: i32) -> (i32, i32) {
    %c0_i32 = arith.constant 0 : i32
    %c0_i32_0 = arith.constant 0 : i32
    %c0_i32_1 = arith.constant 0 : i32
    return %c0_i32, %c0_i32_0 : i32, i32
  }
  func.func @transform_5(%arg0: i32) -> (i32, i32) {
    %c0_i32 = arith.constant 0 : i32
    %c0_i32_0 = arith.constant 0 : i32
    %c0_i32_1 = arith.constant 0 : i32
    return %c0_i32, %c0_i32_0 : i32, i32
  }
  func.func @transform_6(%arg0: i32) -> (i32, i32) {
    %c0_i32 = arith.constant 0 : i32
    %c0_i32_0 = arith.constant 0 : i32
    %c0_i32_1 = arith.constant 0 : i32
    return %c0_i32, %c0_i32_0 : i32, i32
  }
  func.func @transform_7(%arg0: i32) -> (i32, i32) {
    %c0_i32 = arith.constant 0 : i32
    %c0_i32_0 = arith.constant 0 : i32
    return %arg0, %c0_i32 : i32, i32
  }
}

</mosaic_0001>

<bundles_post_ra>
// kernel: tpu_custom_call.1
= control target key start
LH: loop header
LB: loop body
LE: loop exit
PB: predicated region body
PF: predicated region fallthrough
CT: control target
= control target key end

     0   :  { %s2260_s0 = inlined_call_operand.vmem [shape: f32[32,784], index: 0, kind: input, shape index: {}]   ;;  %s2261_s1 = inlined_call_operand.vmem [shape: f32[784,64], index: 1, kind: input, shape index: {}]   ;;  %s2262_s2 = inlined_call_operand.vmem [shape: f32[1,64], index: 2, kind: input, shape index: {}]   ;;  %s2263_s3 = inlined_call_operand.vmem [shape: f32[64,64], index: 3, kind: input, shape index: {}]   ;;  %s2264_s4 = inlined_call_operand.vmem [shape: f32[1,64], index: 4, kind: input, shape index: {}]   ;;  %s2265_s5 = inlined_call_operand.vmem [shape: f32[64,784], index: 5, kind: input, shape index: {}]   ;;  %s2266_s6 = inlined_call_operand.vmem [shape: f32[1,784], index: 6, kind: input, shape index: {}]   ;;  %s2267_s7 = inlined_call_operand.hbm [shape: f32[32,784], index: 7, kind: output, shape index: {}]  }
   0x1   :  { %v71_v0 = vld [vmem:[%s2261_s1 + $0x80] sm:$0xff]  ;;  %v72_v1 = vld [vmem:[%s2261_s1 + $0x88] sm:$0xff]  ;;  %v73_v11 = vld [vmem:[%s2261_s1 + $0x90] sm:$0xff] }
   0x2   :  { %v55_v2 = vld [vmem:[%s2261_s1] sm:$0xff]  ;;  %v1377_v3 = vpack.c.bf16 %v72_v1, %v71_v0  ;;  %v56_v4 = vld [vmem:[%s2261_s1 + $0x8] sm:$0xff]  ;;  %v74_v13 = vld [vmem:[%s2261_s1 + $0x98] sm:$0xff] }
   0x3   :  { %v103_v5 = vld [vmem:[%s2261_s1 + $0x180] sm:$0xff]  ;;  %v104_v6 = vld [vmem:[%s2261_s1 + $0x188] sm:$0xff]  ;;  %v1379_v7 = vpack.c.bf16 %v56_v4, %v55_v2  ;;  %v57_v14 = vld [vmem:[%s2261_s1 + $0x10] sm:$0xff]  ;;  %v1381_v16 = vpack.c.bf16 %v74_v13, %v73_v11 }
   0x4   :  { %v1409_v8 = vpack.c.bf16 %v104_v6, %v103_v5  ;;  %v87_v9 = vld [vmem:[%s2261_s1 + $0x100] sm:$0xff]  ;;  %v88_v10 = vld [vmem:[%s2261_s1 + $0x108] sm:$0xff]  ;;  %1378 = vmatprep.subr.bf16.mxu0 %v1377_v3  ;;  %v58_v15 = vld [vmem:[%s2261_s1 + $0x18] sm:$0xff] }
   0x5   :  { %v1411_v12 = vpack.c.bf16 %v88_v10, %v87_v9  ;;  %1380 = vmatpush3.bf16.msra.mxu0 %v1379_v7  ;;  %v1383_v17 = vpack.c.bf16 %v58_v15, %v57_v14  ;;  %v105_v18 = vld [vmem:[%s2261_s1 + $0x190] sm:$0xff]  ;;  %v106_v19 = vld [vmem:[%s2261_s1 + $0x198] sm:$0xff]  ;;  %v75_v23 = vld [vmem:[%s2261_s1 + $0xa0] sm:$0xff] }
   0x6   :  { %1410 = vmatprep.subr.bf16.mxu1 %v1409_v8  ;;  %v89_v20 = vld [vmem:[%s2261_s1 + $0x110] sm:$0xff]  ;;  %v1413_v21 = vpack.c.bf16 %v106_v19, %v105_v18  ;;  %v90_v22 = vld [vmem:[%s2261_s1 + $0x118] sm:$0xff]  ;;  %v76_v24 = vld [vmem:[%s2261_s1 + $0xa8] sm:$0xff]  ;;  %1382 = vmatprep.subr.bf16.mxu0 %v1381_v16 }
   0x7   :  { %1412 = vmatpush3.bf16.msra.mxu1 %v1411_v12  ;;  %v1415_v25 = vpack.c.bf16 %v90_v22, %v89_v20  ;;  %v1385_v26 = vpack.c.bf16 %v76_v24, %v75_v23  ;;  %v59_v27 = vld [vmem:[%s2261_s1 + $0x20] sm:$0xff]  ;;  %v60_v28 = vld [vmem:[%s2261_s1 + $0x28] sm:$0xff]  ;;  %v77_v35 = vld [vmem:[%s2261_s1 + $0xb0] sm:$0xff] }
   0x8   :  { %v107_v29 = vld [vmem:[%s2261_s1 + $0x1a0] sm:$0xff]  ;;  %1414 = vmatprep.subr.bf16.mxu1 %v1413_v21  ;;  %v108_v30 = vld [vmem:[%s2261_s1 + $0x1a8] sm:$0xff]  ;;  %v1387_v33 = vpack.c.bf16 %v60_v28, %v59_v27  ;;  %v78_v36 = vld [vmem:[%s2261_s1 + $0xb8] sm:$0xff] }
   0x9   :  { %v91_v31 = vld [vmem:[%s2261_s1 + $0x120] sm:$0xff]  ;;  %v92_v32 = vld [vmem:[%s2261_s1 + $0x128] sm:$0xff]  ;;  %1384 = vmatpush3.bf16.msra.mxu0 %v1383_v17  ;;  %v1417_v34 = vpack.c.bf16 %v108_v30, %v107_v29  ;;  %v61_v37 = vld [vmem:[%s2261_s1 + $0x30] sm:$0xff]  ;;  %v1389_v39 = vpack.c.bf16 %v78_v36, %v77_v35 }
   0xa   :  { %1386 = vmatprep.subr.bf16.mxu0 %v1385_v26  ;;  %v1419_v38 = vpack.c.bf16 %v92_v32, %v91_v31  ;;  %v62_v40 = vld [vmem:[%s2261_s1 + $0x38] sm:$0xff]  ;;  %v109_v41 = vld [vmem:[%s2261_s1 + $0x1b0] sm:$0xff]  ;;  %v79_v46 = vld [vmem:[%s2261_s1 + $0xc0] sm:$0xff] }
   0xb   :  { %1416 = vmatpush3.bf16.msra.mxu1 %v1415_v25  ;;  %v110_v42 = vld [vmem:[%s2261_s1 + $0x1b8] sm:$0xff]  ;;  %v93_v44 = vld [vmem:[%s2261_s1 + $0x130] sm:$0xff]  ;;  %v80_v47 = vld [vmem:[%s2261_s1 + $0xc8] sm:$0xff]  ;;  %v1391_v48 = vpack.c.bf16 %v62_v40, %v61_v37 }
   0xc   :  { %1418 = vmatprep.subr.bf16.mxu1 %v1417_v34  ;;  %v1421_v43 = vpack.c.bf16 %v110_v42, %v109_v41  ;;  %v94_v45 = vld [vmem:[%s2261_s1 + $0x138] sm:$0xff]  ;;  %v111_v49 = vld [vmem:[%s2261_s1 + $0x1c0] sm:$0xff]  ;;  %v112_v50 = vld [vmem:[%s2261_s1 + $0x1c8] sm:$0xff]  ;;  %v1393_v52 = vpack.c.bf16 %v80_v47, %v79_v46 }
   0xd   :  { %1388 = vmatpush3.bf16.msra.mxu0 %v1387_v33  ;;  %v1423_v51 = vpack.c.bf16 %v94_v45, %v93_v44  ;;  %v63_v53 = vld [vmem:[%s2261_s1 + $0x40] sm:$0xff]  ;;  %v64_v54 = vld [vmem:[%s2261_s1 + $0x48] sm:$0xff]  ;;  %v1425_v56 = vpack.c.bf16 %v112_v50, %v111_v49  ;;  %v81_v58 = vld [vmem:[%s2261_s1 + $0xd0] sm:$0xff] }
   0xe   :  { %1390 = vmatprep.subr.bf16.mxu0 %v1389_v39  ;;  %v95_v55 = vld [vmem:[%s2261_s1 + $0x140] sm:$0xff]  ;;  %v96_v57 = vld [vmem:[%s2261_s1 + $0x148] sm:$0xff]  ;;  %v82_v59 = vld [vmem:[%s2261_s1 + $0xd8] sm:$0xff]  ;;  %v1395_v62 = vpack.c.bf16 %v64_v54, %v63_v53 }
   0xf   :  { %1420 = vmatpush3.bf16.msra.mxu1 %v1419_v38  ;;  %v113_v60 = vld [vmem:[%s2261_s1 + $0x1d0] sm:$0xff]  ;;  %v114_v61 = vld [vmem:[%s2261_s1 + $0x1d8] sm:$0xff]  ;;  %v1427_v63 = vpack.c.bf16 %v96_v57, %v95_v55  ;;  %v1397_v0 = vpack.c.bf16 %v82_v59, %v81_v58  ;;  %v83_v6 = vld [vmem:[%s2261_s1 + $0xe0] sm:$0xff] }
  0x10   :  { %1422 = vmatprep.subr.bf16.mxu1 %v1421_v43  ;;  %v65_v1 = vld [vmem:[%s2261_s1 + $0x50] sm:$0xff]  ;;  %v66_v2 = vld [vmem:[%s2261_s1 + $0x58] sm:$0xff]  ;;  %v1429_v4 = vpack.c.bf16 %v114_v61, %v113_v60  ;;  %v84_v7 = vld [vmem:[%s2261_s1 + $0xe8] sm:$0xff] }
  0x11   :  { %1392 = vmatpush3.bf16.msra.mxu0 %v1391_v48  ;;  %v97_v3 = vld [vmem:[%s2261_s1 + $0x150] sm:$0xff]  ;;  %v98_v5 = vld [vmem:[%s2261_s1 + $0x158] sm:$0xff]  ;;  %v115_v8 = vld [vmem:[%s2261_s1 + $0x1e0] sm:$0xff]  ;;  %v1399_v10 = vpack.c.bf16 %v66_v2, %v65_v1  ;;  %v1401_v14 = vpack.c.bf16 %v84_v7, %v83_v6 }
  0x12   :  { %1394 = vmatprep.subr.bf16.mxu0 %v1393_v52  ;;  %v116_v9 = vld [vmem:[%s2261_s1 + $0x1e8] sm:$0xff]  ;;  %v67_v11 = vld [vmem:[%s2261_s1 + $0x60] sm:$0xff]  ;;  %v1431_v13 = vpack.c.bf16 %v98_v5, %v97_v3  ;;  %v85_v19 = vld [vmem:[%s2261_s1 + $0xf0] sm:$0xff] }
  0x13   :  { %1424 = vmatpush3.bf16.msra.mxu1 %v1423_v51  ;;  %v28_v12 = vld [vmem:[%s2260_s0 + $0x8] sm:$0xff]  ;;  %v99_v16 = vld [vmem:[%s2261_s1 + $0x160] sm:$0xff]  ;;  %v1433_v18 = vpack.c.bf16 %v116_v9, %v115_v8  ;;  %v86_v20 = vld [vmem:[%s2261_s1 + $0xf8] sm:$0xff] }
  0x14   :  { %1426 = vmatprep.subr.bf16.mxu1 %v1425_v56  ;;  %v68_v15 = vld [vmem:[%s2261_s1 + $0x68] sm:$0xff]  ;;  %237 = vmatprep.mubr.f32.mxu0 %v28_v12  ;;  %v30_v21 = vld [vmem:[%s2260_s0 + $0x18] sm:$0xff]  ;;  %v117_v22 = vld [vmem:[%s2261_s1 + $0x1f0] sm:$0xff]  ;;  %v1405_v26 = vpack.c.bf16 %v86_v20, %v85_v19 }
  0x15   :  { %1396 = vmatpush3.bf16.msra.mxu0 %v1395_v62  ;;  %v100_v17 = vld [vmem:[%s2261_s1 + $0x168] sm:$0xff]  ;;  %v118_v23 = vld [vmem:[%s2261_s1 + $0x1f8] sm:$0xff]  ;;  %322 = vmatprep.mubr.f32.mxu1 %v30_v21  ;;  %v1403_v24 = vpack.c.bf16 %v68_v15, %v67_v11  ;;  %v69_v27 = vld [vmem:[%s2261_s1 + $0x70] sm:$0xff] }
  0x16   :  { %1398 = vmatprep.subr.bf16.mxu0 %v1397_v0  ;;  %v1435_v25 = vpack.c.bf16 %v100_v17, %v99_v16  ;;  %v70_v28 = vld [vmem:[%s2261_s1 + $0x78] sm:$0xff]  ;;  %v101_v29 = vld [vmem:[%s2261_s1 + $0x170] sm:$0xff]  ;;  %v1437_v30 = vpack.c.bf16 %v118_v23, %v117_v22  ;;  %v135_v32 = vld [vmem:[%s2261_s1 + $0x280] sm:$0xff] }
  0x17   :  { %1428 = vmatpush3.bf16.msra.mxu1 %v1427_v63  ;;  %v102_v31 = vld [vmem:[%s2261_s1 + $0x178] sm:$0xff]  ;;  %v136_v33 = vld [vmem:[%s2261_s1 + $0x288] sm:$0xff]  ;;  %v1407_v34 = vpack.c.bf16 %v70_v28, %v69_v27  ;;  %v119_v37 = vld [vmem:[%s2261_s1 + $0x200] sm:$0xff] }
  0x18   :  { %1430 = vmatprep.subr.bf16.mxu1 %v1429_v4  ;;  %v1439_v35 = vpack.c.bf16 %v102_v31, %v101_v29  ;;  %v1441_v36 = vpack.c.bf16 %v136_v33, %v135_v32  ;;  %v120_v38 = vld [vmem:[%s2261_s1 + $0x208] sm:$0xff]  ;;  %v137_v39 = vld [vmem:[%s2261_s1 + $0x290] sm:$0xff]  ;;  %v138_v40 = vld [vmem:[%s2261_s1 + $0x298] sm:$0xff] }
  0x19   :  { %1400 = vmatpush3.bf16.msra.mxu0 %v1399_v10  ;;  %v27_v41 = vld [vmem:[%s2260_s0] sm:$0xff]  ;;  %v1443_v42 = vpack.c.bf16 %v120_v38, %v119_v37  ;;  %v152_v44 = vld [vmem:[%s2261_s1 + $0x308] sm:$0xff]  ;;  %v29_v45 = vld [vmem:[%s2260_s0 + $0x10] sm:$0xff]  ;;  %v1445_v46 = vpack.c.bf16 %v138_v40, %v137_v39 }
  0x1a   :  { %1402 = vmatprep.subr.bf16.mxu0 %v1401_v14  ;;  %v151_v43 = vld [vmem:[%s2261_s1 + $0x300] sm:$0xff]  ;;  %v121_v47 = vld [vmem:[%s2261_s1 + $0x210] sm:$0xff]  ;;  %v122_v48 = vld [vmem:[%s2261_s1 + $0x218] sm:$0xff] }
  0x1b   :  { %1432 = vmatpush3.bf16.msra.mxu1 %v1431_v13  ;;  %v1473_v49 = vpack.c.bf16 %v152_v44, %v151_v43  ;;  %v139_v50 = vld [vmem:[%s2261_s1 + $0x2a0] sm:$0xff]  ;;  %v140_v51 = vld [vmem:[%s2261_s1 + $0x2a8] sm:$0xff]  ;;  %v37_v53 = vld [vmem:[%s2260_s0 + $0x50] sm:$0xff]  ;;  %v1447_v54 = vpack.c.bf16 %v122_v48, %v121_v47 }
  0x1c   :  { %1434 = vmatprep.subr.bf16.mxu1 %v1433_v18  ;;  %v35_v52 = vld [vmem:[%s2260_s0 + $0x40] sm:$0xff]  ;;  %v34_v55 = vld [vmem:[%s2260_s0 + $0x38] sm:$0xff]  ;;  %v1449_v56 = vpack.c.bf16 %v140_v51, %v139_v50  ;;  %v124_v58 = vld [vmem:[%s2261_s1 + $0x228] sm:$0xff] }
  0x1d   :  { %1404 = vmatpush3.bf16.msra.mxu0 %v1403_v24  ;;  %v123_v57 = vld [vmem:[%s2261_s1 + $0x220] sm:$0xff]  ;;  %v36_v59 = vld [vmem:[%s2260_s0 + $0x48] sm:$0xff]  ;;  %v141_v60 = vld [vmem:[%s2261_s1 + $0x2b0] sm:$0xff] }
  0x1e   :  { %1406 = vmatprep.subr.bf16.mxu0 %v1405_v26  ;;  %v142_v61 = vld [vmem:[%s2261_s1 + $0x2b8] sm:$0xff]  ;;  %v44_v63 = vld [vmem:[%s2260_s0 + $0x88] sm:$0xff]  ;;  %v1451_v0 = vpack.c.bf16 %v124_v58, %v123_v57  ;;  %v125_v1 = vld [vmem:[%s2261_s1 + $0x230] sm:$0xff] }
  0x1f   :  { %1436 = vmatpush3.bf16.msra.mxu1 %v1435_v25  ;;  %v42_v62 = vld [vmem:[%s2260_s0 + $0x78] sm:$0xff]  ;;  %v41_v2 = vld [vmem:[%s2260_s0 + $0x70] sm:$0xff]  ;;  %v1453_v3 = vpack.c.bf16 %v142_v61, %v141_v60  ;;  %v143_v5 = vld [vmem:[%s2261_s1 + $0x2c0] sm:$0xff] }
  0x20   :  { %1438 = vmatprep.subr.bf16.mxu1 %v1437_v30  ;;  %v126_v4 = vld [vmem:[%s2261_s1 + $0x238] sm:$0xff]  ;;  %v43_v6 = vld [vmem:[%s2260_s0 + $0x80] sm:$0xff]  ;;  %v144_v7 = vld [vmem:[%s2261_s1 + $0x2c8] sm:$0xff] }
  0x21   :  { %1408 = vmatpush3.bf16.msra.mxu0 %v1407_v34  ;;  %v49_v8 = vld [vmem:[%s2260_s0 + $0xb0] sm:$0xff] }
  0x22   :  { %1442 = vmatprep.subr.bf16.mxu0 %v1441_v36 }
  0x23   :  { %1440 = vmatpush3.bf16.msra.mxu1 %v1439_v35 }
  0x24   :  { %238 = vmatmul.mubr.f32.vlgmr.msra.gmra.mrb[0].mxu0 %v27_v41  ;;  %1474 = vmatprep.subr.bf16.mxu1 %v1473_v49 }
  0x25   :  { %1444 = vmatpush3.bf16.msra.mxu0 %v1443_v42  ;;  %242 = vmatprep.mubr.f32.mxu0 %v35_v52 }
  0x26   :  { %323 = vmatmul.mubr.f32.vlgmr.msra.gmra.mrb[0].mxu1 %v29_v45  ;;  %1446 = vmatprep.subr.bf16.mxu0 %v1445_v46 }
  0x27   :  { %327 = vmatprep.mubr.f32.mxu1 %v37_v53  ;;  %1476 = vmatpush3.bf16.msra.mxu1 %v1473_v49 }
  0x28   :  { %243 = vmatmul.mubr.f32.gmra.mrb[2].mxu0 %v34_v55 }
  0x29   :  { %1448 = vmatpush3.bf16.msra.mxu0 %v1447_v54  ;;  %247 = vmatprep.mubr.f32.mxu0 %v42_v62 }
  0x2a   :  { %328 = vmatmul.mubr.f32.gmra.mrb[2].mxu1 %v36_v59  ;;  %1450 = vmatprep.subr.bf16.mxu0 %v1449_v56 }
  0x2b   :  { %332 = vmatprep.mubr.f32.mxu1 %v44_v63 }
  0x2c   :  { %12 = vsyncpa [#allocation3], 0  ;;  %248 = vmatmul.mubr.f32.gmra.mrb[4].mxu0 %v41_v2  ;;  %v51_v9 = vld [vmem:[%s2260_s0 + $0xc0] sm:$0xff]  ;;  %v1455_v10 = vpack.c.bf16 %v126_v4, %v125_v1  ;;  %v48_v11 = vld [vmem:[%s2260_s0 + $0xa8] sm:$0xff]  ;;  %v1457_v12 = vpack.c.bf16 %v144_v7, %v143_v5  ;;  %vm160_vm0 = vcmask 130048   ;;  %vm532_vm1 = vcmask 523264  }
  0x2d   :  { %1452 = vmatpush3.bf16.msra.mxu0 %v1451_v0  ;;  %v127_v13 = vld [vmem:[%s2261_s1 + $0x240] sm:$0xff]  ;;  %v128_v14 = vld [vmem:[%s2261_s1 + $0x248] sm:$0xff]  ;;  %252 = vmatprep.mubr.f32.mxu0 %v49_v8  ;;  %v50_v15 = vld [vmem:[%s2260_s0 + $0xb8] sm:$0xff] }
  0x2e   :  { %333 = vmatmul.mubr.f32.gmra.mrb[4].mxu1 %v43_v6  ;;  %1454 = vmatprep.subr.bf16.mxu0 %v1453_v3  ;;  %v145_v16 = vld [vmem:[%s2261_s1 + $0x2d0] sm:$0xff]  ;;  %v146_v17 = vld [vmem:[%s2261_s1 + $0x2d8] sm:$0xff]  ;;  %v32_v18 = vld [vmem:[%s2260_s0 + $0x28] sm:$0xff]  ;;  %v1459_v20 = vpack.c.bf16 %v128_v14, %v127_v13 }
  0x2f   :  { %337 = vmatprep.mubr.f32.mxu1 %v51_v9  ;;  %v33_v19 = vld [vmem:[%s2260_s0 + $0x30] sm:$0xff]  ;;  %v1461_v21 = vpack.c.bf16 %v146_v17, %v145_v16  ;;  %v130_v23 = vld [vmem:[%s2261_s1 + $0x258] sm:$0xff]  ;;  %v40_v24 = vld [vmem:[%s2260_s0 + $0x68] sm:$0xff] }
  0x30   :  { %253 = vmatmul.mubr.f32.gmra.mrb[6].mxu0 %v48_v11  ;;  %v129_v22 = vld [vmem:[%s2261_s1 + $0x250] sm:$0xff]  ;;  %v147_v25 = vld [vmem:[%s2261_s1 + $0x2e0] sm:$0xff]  ;;  %v148_v26 = vld [vmem:[%s2261_s1 + $0x2e8] sm:$0xff] }
  0x31   :  { %1456 = vmatpush3.bf16.msra.mxu0 %v1455_v10  ;;  %407 = vmatprep.mubr.f32.mxu0 %v32_v18  ;;  %v47_v27 = vld [vmem:[%s2260_s0 + $0xa0] sm:$0xff]  ;;  %v1463_v28 = vpack.c.bf16 %v130_v23, %v129_v22  ;;  %v1465_v29 = vpack.c.bf16 %v148_v26, %v147_v25  ;;  %v132_v31 = vld [vmem:[%s2261_s1 + $0x268] sm:$0xff]  ;;  %v54_v32 = vld [vmem:[%s2260_s0 + $0xd8] sm:$0xff] }
  0x32   :  { %338 = vmatmul.mubr.f32.gmra.mrb[6].mxu1 %v50_v15  ;;  %1458 = vmatprep.subr.bf16.mxu0 %v1457_v12  ;;  %v131_v30 = vld [vmem:[%s2261_s1 + $0x260] sm:$0xff]  ;;  %v149_v33 = vld [vmem:[%s2261_s1 + $0x2f0] sm:$0xff]  ;;  %v150_v34 = vld [vmem:[%s2261_s1 + $0x2f8] sm:$0xff] }
  0x33   :  { %1327 = vmatprep.mubr.msk.f32.mxu1 %vm160_vm0, %v33_v19  ;;  %v1467_v35 = vpack.c.bf16 %v132_v31, %v131_v30  ;;  %v1469_v36 = vpack.c.bf16 %v150_v34, %v149_v33  ;;  %v133_v37 = vld [vmem:[%s2261_s1 + $0x270] sm:$0xff]  ;;  %v134_v38 = vld [vmem:[%s2261_s1 + $0x278] sm:$0xff]  ;;  %v31_v40 = vld [vmem:[%s2260_s0 + $0x20] sm:$0xff] }
  0x34   :  { %v1471_v39 = vpack.c.bf16 %v134_v38, %v133_v37  ;;  %v39_v41 = vld [vmem:[%s2260_s0 + $0x60] sm:$0xff]  ;;  %v38_v42 = vld [vmem:[%s2260_s0 + $0x58] sm:$0xff]  ;;  %v45_v44 = vld [vmem:[%s2260_s0 + $0x90] sm:$0xff] }
  0x35   :  { %1460 = vmatpush3.bf16.msra.mxu0 %v1459_v20  ;;  %v46_v43 = vld [vmem:[%s2260_s0 + $0x98] sm:$0xff]  ;;  %v53_v45 = vld [vmem:[%s2260_s0 + $0xd0] sm:$0xff]  ;;  %v52_v46 = vld [vmem:[%s2260_s0 + $0xc8] sm:$0xff] }
  0x36   :  { %1328 = vmatmul.mubr.msk.f32.vlgmr.msra.gmra.mrb[8].mxu1 %vm160_vm0, %v40_v24  ;;  %1462 = vmatprep.subr.bf16.mxu0 %v1461_v21  ;;  %v517_v47 = vld [vmem:[%s2263_s3] sm:$0xff]  ;;  %v518_v48 = vld [vmem:[%s2263_s3 + $0x8] sm:$0xff]  ;;  %v519_v50 = vld [vmem:[%s2263_s3 + $0x10] sm:$0xff] }
  0x37   :  { %1330 = vmatprep.mubr.msk.f32.mxu1 %vm160_vm0, %v47_v27  ;;  %v1477_v49 = vpack.c.bf16 %v518_v48, %v517_v47  ;;  %v520_v51 = vld [vmem:[%s2263_s3 + $0x18] sm:$0xff]  ;;  %v521_v53 = vld [vmem:[%s2263_s3 + $0x20] sm:$0xff]  ;;  %v522_v54 = vld [vmem:[%s2263_s3 + $0x28] sm:$0xff] }
  0x38   :  { %v1481_v52 = vpack.c.bf16 %v520_v51, %v519_v50  ;;  %v1485_v55 = vpack.c.bf16 %v522_v54, %v521_v53  ;;  %v523_v56 = vld [vmem:[%s2263_s3 + $0x30] sm:$0xff]  ;;  %v524_v57 = vld [vmem:[%s2263_s3 + $0x38] sm:$0xff]  ;;  %v635_v59 = vld [vmem:[%s2265_s5 + $0x8] sm:$0xff] }
  0x39   :  { %1464 = vmatpush3.bf16.msra.mxu0 %v1463_v28  ;;  %1478 = vmatprep.subr.bf16.mxu1 %v1477_v49  ;;  %v1489_v58 = vpack.c.bf16 %v524_v57, %v523_v56  ;;  %v642_v60 = vld [vmem:[%s2265_s5 + $0x40] sm:$0xff]  ;;  %v641_v63 = vld [vmem:[%s2265_s5 + $0x38] sm:$0xff]  ;;  %v644_v1 = vld [vmem:[%s2265_s5 + $0x50] sm:$0xff] }
  0x3a   :  { %1331 = vmatmul.mubr.msk.f32.gmra.mrb[10].mxu1 %vm160_vm0, %v54_v32  ;;  %1466 = vmatprep.subr.bf16.mxu0 %v1465_v29  ;;  %v634_v61 = vld [vmem:[%s2265_s5] sm:$0xff]  ;;  %v1493_v62 = vpack.c.bf16 %v642_v60, %v635_v59  ;;  %v637_v0 = vld [vmem:[%s2265_s5 + $0x18] sm:$0xff]  ;;  %v656_v5 = vld [vmem:[%s2265_s5 + $0xb0] sm:$0xff] }
  0x3b   :  { %1480 = vmatpush3.bf16.msra.mxu1 %v1477_v49  ;;  %v1495_v2 = vpack.c.bf16 %v641_v63, %v634_v61  ;;  %v1509_v3 = vpack.c.bf16 %v644_v1, %v637_v0  ;;  %v649_v4 = vld [vmem:[%s2265_s5 + $0x78] sm:$0xff]  ;;  %v648_v6 = vld [vmem:[%s2265_s5 + $0x70] sm:$0xff]  ;;  %v655_v7 = vld [vmem:[%s2265_s5 + $0xa8] sm:$0xff] }
  0x3c   :  { %1482 = vmatprep.subr.bf16.mxu1 %v1481_v52  ;;  %v1497_v8 = vpack.c.bf16 %v656_v5, %v649_v4  ;;  %v1499_v9 = vpack.c.bf16 %v655_v7, %v648_v6  ;;  %v663_v10 = vld [vmem:[%s2265_s5 + $0xe8] sm:$0xff]  ;;  %v670_v11 = vld [vmem:[%s2265_s5 + $0x120] sm:$0xff]  ;;  %v669_v14 = vld [vmem:[%s2265_s5 + $0x118] sm:$0xff] }
  0x3d   :  { %1468 = vmatpush3.bf16.msra.mxu0 %v1467_v35  ;;  %v1501_v12 = vpack.c.bf16 %v670_v11, %v663_v10  ;;  %v662_v13 = vld [vmem:[%s2265_s5 + $0xe0] sm:$0xff]  ;;  %v636_v0 = vld [vmem:[%s2265_s5 + $0x10] sm:$0xff]  ;;  %v643_v1 = vld [vmem:[%s2265_s5 + $0x48] sm:$0xff] }
  0x3e   :  { %1470 = vmatprep.subr.bf16.mxu0 %v1469_v36  ;;  %v1503_v15 = vpack.c.bf16 %v669_v14, %v662_v13  ;;  %v1135_v17 = vld [vmem:[%s2262_s2] ss:$0 sm:$0xff]  ;;  %v1511_v7 = vpack.c.bf16 %v643_v1, %v636_v0  ;;  %v657_v13 = vld [vmem:[%s2265_s5 + $0xb8] sm:$0xff]  ;;  %v667_v0 = vld [vmem:[%s2265_s5 + $0x108] sm:$0xff] }
  0x3f   :  { %1484 = vmatpush3.bf16.msra.mxu1 %v1481_v52  ;;  %v658_v4 = vld [vmem:[%s2265_s5 + $0xc0] sm:$0xff] }
  0x40   :  { %1486 = vmatprep.subr.bf16.mxu1 %v1485_v55  ;;  %v674_v1 = vld [vmem:[%s2265_s5 + $0x140] sm:$0xff] }
  0x41   :  { %1472 = vmatpush3.bf16.msra.mxu0 %v1471_v39 }
  0x42   :  { %1494 = vmatprep.subr.bf16.mxu0 %v1493_v62 }
  0x43   :  { %1488 = vmatpush3.bf16.msra.mxu1 %v1485_v55 }
  0x44   :  { %408 = vmatmul.mubr.f32.vlgmr.msra.gmra.mrb[8].mxu0 %v31_v40  ;;  %1490 = vmatprep.subr.bf16.mxu1 %v1489_v58 }
  0x45   :  { %412 = vmatprep.mubr.f32.mxu0 %v39_v41  ;;  %1496 = vmatpush1.bf16.msra.mxu0 %v1495_v2 }
  0x46   :  { %1498 = vmatprep.subr.bf16.mxu0 %v1497_v8 }
  0x47   :  { %1492 = vmatpush3.bf16.msra.mxu1 %v1489_v58 }
  0x48   :  { %413 = vmatmul.mubr.f32.gmra.mrb[10].mxu0 %v38_v42  ;;  %1510 = vmatprep.subr.bf16.mxu1 %v1509_v3  ;;  %v651_v3 = vld [vmem:[%s2265_s5 + $0x88] sm:$0xff] }
  0x49   :  { %417 = vmatprep.mubr.f32.mxu0 %v46_v43  ;;  %1500 = vmatpush1.bf16.msra.mxu0 %v1499_v9  ;;  %v1513_v11 = vpack.c.bf16 %v658_v4, %v651_v3  ;;  %v675_v3 = vld [vmem:[%s2265_s5 + $0x148] sm:$0xff] }
  0x4a   :  { %1502 = vmatprep.subr.bf16.mxu0 %v1501_v12  ;;  %v650_v12 = vld [vmem:[%s2265_s5 + $0x80] sm:$0xff] }
  0x4c   :  { %418 = vmatmul.mubr.f32.gmra.mrb[12].mxu0 %v45_v44 }
  0x4d   :  { %422 = vmatprep.mubr.f32.mxu0 %v53_v45  ;;  %1504 = vmatpush1.bf16.msra.mxu0 %v1503_v15  ;;  %v665_v15 = vld [vmem:[%s2265_s5 + $0xf8] sm:$0xff] }
  0x50   :  { %423 = vmatmul.mubr.f32.gmra.mrb[14].mxu0 %v52_v46 }
  0xf7   :  { %v1193_v16 = vpop.f32.mrb[0].mxu0 }
  0xf8   :  { %v1194_v18 = vpop.f32.mrb[1].mxu0 }
  0xf9   :  { %v1237_v19 = vpop.f32.mrb[0].mxu1  ;;  %v1195_v20 = vadd.f32 %v1194_v18, %v1193_v16  ;;  %v672_v16 = vld [vmem:[%s2265_s5 + $0x130] sm:$0xff] }
  0xfa   :  { %v1238_v21 = vpop.f32.mrb[1].mxu1 }
  0xfb   :  { %v1239_v22 = vadd.f32 %v1238_v21, %v1237_v19  ;;  %v240_v23 = vadd.f32 %v1195_v20, %v1135_v17  ;;  %v1196_v24 = vpop.f32.mrb[2].mxu0  ;;  %v1515_v19 = vpack.c.bf16 %v657_v13, %v650_v12  ;;  %v681_v12 = vld [vmem:[%s2265_s5 + $0x178] sm:$0xff] }
  0xfc   :  { %v1197_v25 = vpop.f32.mrb[3].mxu0 }
  0xfd   :  { %v1240_v26 = vpop.f32.mrb[2].mxu1  ;;  %v325_v27 = vadd.f32 %v1239_v22, %v240_v23  ;;  %v1198_v28 = vadd.f32 %v1197_v25, %v1196_v24  ;;  %v1517_v22 = vpack.c.bf16 %v672_v16, %v665_v15  ;;  %v664_v23 = vld [vmem:[%s2265_s5 + $0xf0] sm:$0xff]  ;;  %v671_v24 = vld [vmem:[%s2265_s5 + $0x128] sm:$0xff]  ;;  %v682_v15 = vld [vmem:[%s2265_s5 + $0x180] sm:$0xff] }
  0xfe   :  { %v1241_v29 = vpop.f32.mrb[3].mxu1  ;;  %v689_v16 = vld [vmem:[%s2265_s5 + $0x1b8] sm:$0xff] }
  0xff   :  { %v1242_v30 = vadd.f32 %v1241_v29, %v1240_v26  ;;  %v245_v31 = vadd.f32 %v1198_v28, %v1135_v17  ;;  %v1199_v32 = vpop.f32.mrb[4].mxu0  ;;  %v1519_v26 = vpack.c.bf16 %v671_v24, %v664_v23  ;;  %v677_v28 = vld [vmem:[%s2265_s5 + $0x158] sm:$0xff]  ;;  %v684_v29 = vld [vmem:[%s2265_s5 + $0x190] sm:$0xff]  ;;  %v1553_v23 = vpack.c.bf16 %v689_v16, %v682_v15 }
 0x100   :  { %v1200_v33 = vpop.f32.mrb[5].mxu0 }
 0x101   :  { %v1243_v34 = vpop.f32.mrb[4].mxu1  ;;  %v330_v35 = vadd.f32 %v1242_v30, %v245_v31  ;;  %v1201_v36 = vadd.f32 %v1200_v33, %v1199_v32  ;;  %v679_v30 = vld [vmem:[%s2265_s5 + $0x168] sm:$0xff]  ;;  %v1505_v31 = vpack.c.bf16 %v684_v29, %v677_v28  ;;  %v676_v32 = vld [vmem:[%s2265_s5 + $0x150] sm:$0xff] }
 0x102   :  { %v1244_v37 = vpop.f32.mrb[5].mxu1  ;;  %v683_v33 = vld [vmem:[%s2265_s5 + $0x188] sm:$0xff] }
 0x103   :  { %v1245_v38 = vadd.f32 %v1244_v37, %v1243_v34  ;;  %v250_v39 = vadd.f32 %v1201_v36, %v1135_v17  ;;  %v1202_v40 = vpop.f32.mrb[6].mxu0  ;;  %v1507_v34 = vpack.c.bf16 %v683_v33, %v676_v32  ;;  %v678_v36 = vld [vmem:[%s2265_s5 + $0x160] sm:$0xff]  ;;  %v685_v37 = vld [vmem:[%s2265_s5 + $0x198] sm:$0xff]  ;;  %1506 = vmatprep.subr.bf16.mxu0 %v1505_v31 }
 0x104   :  { %v1203_v41 = vpop.f32.mrb[7].mxu0 }
 0x105   :  { %v1246_v42 = vpop.f32.mrb[6].mxu1  ;;  %v335_v43 = vadd.f32 %v1245_v38, %v250_v39  ;;  %v1204_v44 = vadd.f32 %v1203_v41, %v1202_v40  ;;  %v1523_v39 = vpack.c.bf16 %v685_v37, %v678_v36  ;;  %1508 = vmatpush1.bf16.msra.mxu0 %v1507_v34  ;;  %v639_v40 = vld [vmem:[%s2265_s5 + $0x28] sm:$0xff]  ;;  %v646_v41 = vld [vmem:[%s2265_s5 + $0x60] sm:$0xff] }
 0x106   :  { %v1247_v45 = vpop.f32.mrb[7].mxu1 }
 0x107   :  { %v1248_v46 = vadd.f32 %v1247_v45, %v1246_v42  ;;  %v255_v47 = vadd.f32 %v1204_v44, %v1135_v17  ;;  %v640_v42 = vld [vmem:[%s2265_s5 + $0x30] sm:$0xff]  ;;  %v647_v44 = vld [vmem:[%s2265_s5 + $0x68] sm:$0xff]  ;;  %v1585_v45 = vmov 0.0  }
 0x108   :  { %803 = vmatprep.mubr.f32.mxu0 %v1585_v45 }
 0x109   :  { %v1329_v48 = vpop.f32.mrb[8].mxu1  ;;  %v340_v49 = vadd.f32 %v1248_v46, %v255_v47  ;;  %v1541_v46 = vpack.c.bf16 %v647_v44, %v640_v42  ;;  %v1140_v47 = vld [vmem:[%s2264_s4] ss:$0 sm:$0xff] }
 0x10a   :  { %v494_v50 = vpop.f32.mrb[9].mxu1 }
 0x10d   :  { %v1332_v51 = vpop.f32.mrb[10].mxu1 }
 0x10e   :  { %v504_v52 = vpop.f32.mrb[11].mxu1 }
 0x117   :  { %v1281_v53 = vpop.f32.mrb[8].mxu0 }
 0x118   :  { %v1282_v54 = vpop.f32.mrb[9].mxu0 }
 0x119   :  { %v1283_v55 = vadd.f32 %v1282_v54, %v1281_v53  ;;  %v660_v54 = vld [vmem:[%s2265_s5 + $0xd0] sm:$0xff] }
 0x11b   :  { %v1284_v56 = vpop.f32.mrb[10].mxu0  ;;  %v410_v57 = vadd.f32 %v1283_v55, %v325_v27  ;;  %v654_v55 = vld [vmem:[%s2265_s5 + $0xa0] sm:$0xff] }
 0x11c   :  { %v1285_v58 = vpop.f32.mrb[11].mxu0 }
 0x11d   :  { %v1286_v59 = vadd.f32 %v1285_v58, %v1284_v56  ;;  %v495_v60 = vadd.f32 %v494_v50, %v410_v57  ;;  %v645_v50 = vld [vmem:[%s2265_s5 + $0x58] sm:$0xff] }
 0x11e   :  { %v661_v56 = vld [vmem:[%s2265_s5 + $0xd8] sm:$0xff] }
 0x11f   :  { %v415_v61 = vadd.f32 %v1286_v59, %v330_v35  ;;  %v513_v62 = vmax.f32 %v495_v60, 0.0  ;;  %v1287_v63 = vpop.f32.mrb[12].mxu0  ;;  %v686_v35 = vld [vmem:[%s2265_s5 + $0x1a0] sm:$0xff]  ;;  %v652_v60 = vld [vmem:[%s2265_s5 + $0x90] sm:$0xff] }
 0x120   :  { %v1288_v2 = vpop.f32.mrb[13].mxu0  ;;  %v1521_v38 = vpack.c.bf16 %v686_v35, %v679_v30  ;;  %v690_v30 = vld [vmem:[%s2266_s6] sm:$0x7f]  ;;  %s1586_s6 = smov [#allocation2]  }
 0x121   :  { %v500_v5 = vadd.f32 %v1329_v48, %v415_v61  ;;  %v1289_v6 = vadd.f32 %v1288_v2, %v1287_v63  ;;  %1349 = vmatprep.mubr.msk.f32.mxu1 %vm532_vm1, %v513_v62  ;;  %v659_v61 = vld [vmem:[%s2265_s5 + $0xc8] sm:$0xff]  ;;  %v1545_v63 = vpack.c.bf16 %v661_v56, %v654_v55  ;;  %v668_v2 = vld [vmem:[%s2265_s5 + $0x110] sm:$0xff]  ;;  %s1124_s20 = sshll.u32 %s1586_s6, 4  ;;  %s1125_s20 = int_to_ptr.vmem [resolvable:$true] %s1124_s20 }
 0x122   :  { %v1531_v4 = vpack.c.bf16 %v659_v61, %v652_v60  ;;  %s1561_s3 = scalar_lea.vmem %s1125_s20, 3584  ;;  %p1566_p1 = scmp.lt.s32.totalorder %s1125_s20, %s1125_s20 }
 0x123   :  { %v514_v8 = vmax.f32 %v500_v5, 0.0  ;;  %v1290_v9 = vpop.f32.mrb[14].mxu0  ;;  %v420_v10 = vadd.f32 %v1289_v6, %v335_v43  ;;  %v1525_v43 = vpack.c.bf16 %v646_v41, %v639_v40  ;;  %p1562_p0 = scmp.ne.s32.totalorder %s1125_s20, %s1561_s3  ;;  %p1567_p2 = scmp.lt.s32.totalorder %s1561_s3, %s1561_s3 }
 0x124   :  { %v1291_v14 = vpop.f32.mrb[15].mxu0 }
 0x125   :  { %v1292_v17 = vadd.f32 %v1291_v14, %v1290_v9  ;;  %v505_v18 = vadd.f32 %v504_v52, %v420_v10  ;;  %1350 = vmatmul.mubr.msk.f32.vlgmr.msra.gmra.mrb[12].mxu1 %vm532_vm1, %v514_v8  ;;  %1526 = vmatprep.subr.bf16.mxu0 %v1525_v43  ;;  %v653_v52 = vld [vmem:[%s2265_s5 + $0x98] sm:$0xff]  ;;  %v1533_v10 = vpack.c.bf16 %v674_v1, %v667_v0  ;;  %v688_v14 = vld [vmem:[%s2265_s5 + $0x1b0] sm:$0xff]  ;;  %p1568_p3 = por %p1567_p2, %p1566_p1 }
 0x126   :  { %1512 = vmatpush1.bf16.msra.mxu1 %v1511_v7  ;;  %v1529_v62 = vpack.c.bf16 %v660_v54, %v653_v52  ;;  %v666_v7 = vld [vmem:[%s2265_s5 + $0x100] sm:$0xff]  ;;  %v673_v8 = vld [vmem:[%s2265_s5 + $0x138] sm:$0xff] }
 0x127   :  { %v425_v20 = vadd.f32 %v1292_v17, %v340_v49  ;;  %v515_v21 = vmax.f32 %v505_v18, 0.0  ;;  %1514 = vmatprep.subr.bf16.mxu1 %v1513_v11  ;;  %v638_v49 = vld [vmem:[%s2265_s5 + $0x20] sm:$0xff]  ;;  %v1549_v11 = vpack.c.bf16 %v675_v3, %v668_v2  ;;  %v1535_v17 = vpack.c.bf16 %v673_v8, %v666_v7  ;;  %p1569_p4 = pnand %p1568_p3, %p1562_p0 }
 0x128   :  { %v1527_v57 = vpack.c.bf16 %v645_v50, %v638_v49 }
 0x129   :  { %v510_v25 = vadd.f32 %v1332_v51, %v425_v20  ;;  %1352 = vmatprep.mubr.msk.f32.mxu1 %vm532_vm1, %v515_v21  ;;  %v680_v20 = vld [vmem:[%s2265_s5 + $0x170] sm:$0xff]  ;;  %v687_v21 = vld [vmem:[%s2265_s5 + $0x1a8] sm:$0xff] }
 0x12a   :  { %1516 = vmatpush1.bf16.msra.mxu1 %v1515_v19  ;;  %v1539_v24 = vpack.c.bf16 %v687_v21, %v680_v20 }
 0x12b   :  { %v516_v27 = vmax.f32 %v510_v25, 0.0  ;;  %1518 = vmatprep.subr.bf16.mxu1 %v1517_v22  ;;  %v1537_v22 = vpack.c.bf16 %v688_v14, %v681_v12 }
 0x12d   :  { %1353 = vmatmul.mubr.msk.f32.gmra.mrb[14].mxu1 %vm532_vm1, %v516_v27 }
 0x12e   :  { %1520 = vmatpush1.bf16.msra.mxu1 %v1519_v26  ;;  %892 = vmatprep.mubr.f32.mxu1 %v1585_v45  ;;  %v692_v26 = vlaneseq }
 0x12f   :  { %1522 = vmatprep.subr.bf16.mxu1 %v1521_v38 }
 0x130   :  { %v693_v27 = vshrl.u32 %v692_v26, 7 }
 0x132   :  { %1524 = vmatpush1.bf16.msra.mxu1 %v1523_v39  ;;  %v694_v28 = vsub.s32 0, %v693_v27  ;;  %v702_v29 = vsub.s32 2, %v693_v27  ;;  %v698_v31 = vsub.s32 1, %v693_v27  ;;  %v706_v32 = vsub.s32 3, %v693_v27 }
 0x133   :  { %1542 = vmatprep.subr.bf16.mxu1 %v1541_v46  ;;  %v718_v60 = vsub.s32 6, %v693_v27 }
 0x134   :  { %v695_v33 = vrot.slane %v690_v30, %v694_v28  ;;  %v703_v34 = vrot.slane %v690_v30, %v702_v29  ;;  %v699_v35 = vrot.slane %v690_v30, %v698_v31  ;;  %v707_v36 = vrot.slane %v690_v30, %v706_v32 }
 0x135   :  { %v719_v7 = vrot.slane %v690_v30, %v718_v60 }
 0x1f8   :  { %v1351_v48 = vpop.f32.mrb[12].mxu1 }
 0x1f9   :  { %v611_v51 = vpop.f32.mrb[13].mxu1  ;;  %v617_v58 = vadd.f32 %v1351_v48, %v1140_v47 }
 0x1fa   :  { %v612_v53 = vadd.f32 %v1140_v47, %v611_v51 }
 0x1fb   :  { %v631_v5 = vmax.f32 %v617_v58, 0.0 }
 0x1fc   :  { %v630_v59 = vmax.f32 %v612_v53, 0.0 }
 0x1fe   :  { %1145 = vmatmul.mubr.msk.f32.vlgmr.msra.gmra.mrb[16].mxu0 %vm532_vm1, %v630_v59  ;;  %1149 = vmatmul.mubr.msk.f32.vlgmr.msra.gmra.mrb[16].mxu1 %vm532_vm1, %v630_v59 }
 0x1ff   :  { %1528 = vmatpush1.bf16.msra.mxu0 %v1527_v57  ;;  %1544 = vmatpush3.bf16.msra.mxu1 %v1541_v46 }
 0x200   :  { %v1354_v6 = vpop.f32.mrb[14].mxu1  ;;  %809 = vmatprep.mubr.f32.mxu0 %v1585_v45  ;;  %898 = vmatprep.mubr.f32.mxu1 %v1585_v45 }
 0x201   :  { %v621_v9 = vpop.f32.mrb[15].mxu1  ;;  %1530 = vmatprep.subr.bf16.mxu0 %v1529_v62  ;;  %1546 = vmatprep.subr.bf16.mxu1 %v1545_v63  ;;  %v627_v18 = vadd.f32 %v1354_v6, %v1140_v47 }
 0x202   :  { %v622_v13 = vadd.f32 %v1140_v47, %v621_v9  ;;  %1146 = vmatmul.mubr.msk.f32.gmra.mrb[18].mxu0 %vm532_vm1, %v631_v5  ;;  %1150 = vmatmul.mubr.msk.f32.gmra.mrb[18].mxu1 %vm532_vm1, %v631_v5 }
 0x203   :  { %1532 = vmatpush1.bf16.msra.mxu0 %v1531_v4  ;;  %1548 = vmatpush3.bf16.msra.mxu1 %v1545_v63  ;;  %v633_v25 = vmax.f32 %v627_v18, 0.0  ;;  %v714_v63 = vsub.s32 5, %v693_v27 }
 0x204   :  { %v632_v19 = vmax.f32 %v622_v13, 0.0  ;;  %815 = vmatprep.mubr.f32.mxu0 %v1585_v45  ;;  %904 = vmatprep.mubr.f32.mxu1 %v1585_v45 }
 0x205   :  { %1534 = vmatprep.subr.bf16.mxu0 %v1533_v10  ;;  %1550 = vmatprep.subr.bf16.mxu1 %v1549_v11  ;;  %v715_v10 = vrot.slane %v690_v30, %v714_v63 }
 0x206   :  { %1147 = vmatmul.mubr.msk.f32.gmra.mrb[20].mxu0 %vm532_vm1, %v632_v19  ;;  %1151 = vmatmul.mubr.msk.f32.gmra.mrb[20].mxu1 %vm532_vm1, %v632_v19 }
 0x207   :  { %1536 = vmatpush1.bf16.msra.mxu0 %v1535_v17  ;;  %1552 = vmatpush3.bf16.msra.mxu1 %v1549_v11 }
 0x208   :  { %821 = vmatprep.mubr.f32.mxu0 %v1585_v45  ;;  %910 = vmatprep.mubr.f32.mxu1 %v1585_v45 }
 0x209   :  { %1538 = vmatprep.subr.bf16.mxu0 %v1537_v22  ;;  %1554 = vmatprep.subr.bf16.mxu1 %v1553_v23 }
 0x20a   :  { %1148 = vmatmul.mubr.msk.f32.gmra.mrb[22].mxu0 %vm532_vm1, %v633_v25  ;;  %1152 = vmatmul.mubr.msk.f32.gmra.mrb[22].mxu1 %vm532_vm1, %v633_v25 }
 0x20b   :  { %1540 = vmatpush1.bf16.msra.mxu0 %v1539_v24  ;;  %1556 = vmatpush3.bf16.msra.mxu1 %v1553_v23 }
 0x20c   :  { %1371 = vmatprep.mubr.msk.f32.mxu1 %vm532_vm1, %v630_v59  ;;  %981 = vmatprep.mubr.f32.mxu0 %v1585_v45 }
 0x20e   :  { %1153 = vmatmul.mubr.msk.f32.vlgmr.msra.gmra.mrb[24].mxu0 %vm532_vm1, %v630_v59  ;;  %1372 = vmatmul.mubr.msk.f32.vlgmr.msra.gmra.mrb[24].mxu1 %vm532_vm1, %v631_v5  ;;  %v710_v59 = vsub.s32 4, %v693_v27 }
 0x20f   :  { %1374 = vmatprep.mubr.msk.f32.mxu1 %vm532_vm1, %v632_v19  ;;  %987 = vmatprep.mubr.f32.mxu0 %v1585_v45 }
 0x210   :  { %v711_v6 = vrot.slane %v690_v30, %v710_v59 }
 0x212   :  { %1154 = vmatmul.mubr.msk.f32.gmra.mrb[26].mxu0 %vm532_vm1, %v631_v5  ;;  %1375 = vmatmul.mubr.msk.f32.gmra.mrb[26].mxu1 %vm532_vm1, %v633_v25 }
 0x213   :  { %993 = vmatprep.mubr.f32.mxu0 %v1585_v45 }
 0x216   :  { %1155 = vmatmul.mubr.msk.f32.gmra.mrb[28].mxu0 %vm532_vm1, %v632_v19 }
 0x217   :  { %999 = vmatprep.mubr.f32.mxu0 %v1585_v45 }
 0x21a   :  { %1156 = vmatmul.mubr.msk.f32.gmra.mrb[30].mxu0 %vm532_vm1, %v633_v25 }
 0x2d1   :  { %v805_v37 = vpop.f32.mrb[16].mxu0  ;;  %v894_v38 = vpop.f32.mrb[16].mxu1 }
 0x2d2   :  { %v806_v39 = vadd.f32 %v805_v37, %v695_v33  ;;  %v895_v40 = vadd.f32 %v894_v38, %v703_v34  ;;  %v807_v41 = vpop.f32.mrb[17].mxu0  ;;  %v896_v42 = vpop.f32.mrb[17].mxu1 }
 0x2d3   :  { %v808_v43 = vadd.f32 %v807_v41, %v699_v35  ;;  %v897_v44 = vadd.f32 %v896_v42, %v707_v36 }
 0x2d4   :  { %1091 = vst [vmem:[#allocation2] sm:$0xff] %v806_v39  ;;  %1093 = vst [vmem:[#allocation2 + $0x10] sm:$0xff] %v895_v40 }
 0x2d5   :  { %1092 = vst [vmem:[#allocation2 + $0x8] sm:$0xff] %v808_v43  ;;  %1094 = vst [vmem:[#allocation2 + $0x18] sm:$0xff] %v897_v44  ;;  %v811_v45 = vpop.f32.mrb[18].mxu0  ;;  %v900_v46 = vpop.f32.mrb[18].mxu1 }
 0x2d6   :  { %v812_v47 = vadd.f32 %v811_v45, %v695_v33  ;;  %v901_v48 = vadd.f32 %v900_v46, %v703_v34  ;;  %v813_v49 = vpop.f32.mrb[19].mxu0  ;;  %v902_v50 = vpop.f32.mrb[19].mxu1 }
 0x2d7   :  { %v814_v51 = vadd.f32 %v813_v49, %v699_v35  ;;  %v903_v52 = vadd.f32 %v902_v50, %v707_v36 }
 0x2d8   :  { %1098 = vst [vmem:[#allocation2 + $0x38] sm:$0xff] %v812_v47  ;;  %1100 = vst [vmem:[#allocation2 + $0x48] sm:$0xff] %v901_v48 }
 0x2d9   :  { %1099 = vst [vmem:[#allocation2 + $0x40] sm:$0xff] %v814_v51  ;;  %1101 = vst [vmem:[#allocation2 + $0x50] sm:$0xff] %v903_v52  ;;  %v817_v53 = vpop.f32.mrb[20].mxu0  ;;  %v906_v54 = vpop.f32.mrb[20].mxu1 }
 0x2da   :  { %v818_v55 = vadd.f32 %v817_v53, %v695_v33  ;;  %v907_v56 = vadd.f32 %v906_v54, %v703_v34  ;;  %v819_v57 = vpop.f32.mrb[21].mxu0  ;;  %v908_v58 = vpop.f32.mrb[21].mxu1 }
 0x2db   :  { %v820_v61 = vadd.f32 %v819_v57, %v699_v35  ;;  %v909_v62 = vadd.f32 %v908_v58, %v707_v36 }
 0x2dc   :  { %1105 = vst [vmem:[#allocation2 + $0x70] sm:$0xff] %v818_v55  ;;  %1107 = vst [vmem:[#allocation2 + $0x80] sm:$0xff] %v907_v56 }
 0x2dd   :  { %1106 = vst [vmem:[#allocation2 + $0x78] sm:$0xff] %v820_v61  ;;  %1108 = vst [vmem:[#allocation2 + $0x88] sm:$0xff] %v909_v62  ;;  %v823_v0 = vpop.f32.mrb[22].mxu0  ;;  %v912_v1 = vpop.f32.mrb[22].mxu1 }
 0x2de   :  { %v824_v2 = vadd.f32 %v823_v0, %v695_v33  ;;  %v913_v3 = vadd.f32 %v912_v1, %v703_v34  ;;  %v825_v4 = vpop.f32.mrb[23].mxu0  ;;  %v914_v5 = vpop.f32.mrb[23].mxu1 }
 0x2df   :  { %v826_v8 = vadd.f32 %v825_v4, %v699_v35  ;;  %v915_v9 = vadd.f32 %v914_v5, %v707_v36 }
 0x2e0   :  { %1112 = vst [vmem:[#allocation2 + $0xa8] sm:$0xff] %v824_v2  ;;  %1114 = vst [vmem:[#allocation2 + $0xb8] sm:$0xff] %v913_v3 }
 0x2e1   :  { %1113 = vst [vmem:[#allocation2 + $0xb0] sm:$0xff] %v826_v8  ;;  %1115 = vst [vmem:[#allocation2 + $0xc0] sm:$0xff] %v915_v9  ;;  %v983_v11 = vpop.f32.mrb[24].mxu0  ;;  %v1373_v12 = vpop.f32.mrb[24].mxu1 }
 0x2e2   :  { %v984_v13 = vadd.f32 %v983_v11, %v711_v6  ;;  %v1078_v14 = vadd.f32 %v1373_v12, %v719_v7  ;;  %v985_v15 = vpop.f32.mrb[25].mxu0  ;;  %v1072_v16 = vpop.f32.mrb[25].mxu1 }
 0x2e3   :  { %v986_v17 = vadd.f32 %v985_v15, %v715_v10  ;;  %v1073_v18 = vadd.f32 %v1072_v16, %v719_v7 }
 0x2e4   :  { %1095 = vst [vmem:[#allocation2 + $0x20] sm:$0xff] %v984_v13  ;;  %1104 = vst.msk [vmem:[#allocation2 + $0x68] sm:$0xff] %vm160_vm0, %v1078_v14 }
 0x2e5   :  { %1096 = vst [vmem:[#allocation2 + $0x28] sm:$0xff] %v986_v17  ;;  %1097 = vst.msk [vmem:[#allocation2 + $0x30] sm:$0xff] %vm160_vm0, %v1073_v18  ;;  %v989_v19 = vpop.f32.mrb[26].mxu0  ;;  %v1376_v20 = vpop.f32.mrb[26].mxu1 }
 0x2e6   :  { %v990_v21 = vadd.f32 %v989_v19, %v711_v6  ;;  %v1088_v22 = vadd.f32 %v1376_v20, %v719_v7  ;;  %v991_v23 = vpop.f32.mrb[27].mxu0  ;;  %v1082_v24 = vpop.f32.mrb[27].mxu1 }
 0x2e7   :  { %v992_v25 = vadd.f32 %v991_v23, %v715_v10  ;;  %v1083_v26 = vadd.f32 %v1082_v24, %v719_v7 }
 0x2e8   :  { %1102 = vst [vmem:[#allocation2 + $0x58] sm:$0xff] %v990_v21  ;;  %1118 = vst.msk [vmem:[#allocation2 + $0xd8] sm:$0xff] %vm160_vm0, %v1088_v22 }
 0x2e9   :  { %1103 = vst [vmem:[#allocation2 + $0x60] sm:$0xff] %v992_v25  ;;  %1111 = vst.msk [vmem:[#allocation2 + $0xa0] sm:$0xff] %vm160_vm0, %v1083_v26  ;;  %v995_v27 = vpop.f32.mrb[28].mxu0 }
 0x2ea   :  { %v996_v28 = vadd.f32 %v995_v27, %v711_v6  ;;  %v997_v29 = vpop.f32.mrb[29].mxu0 }
 0x2eb   :  { %v998_v30 = vadd.f32 %v997_v29, %v715_v10 }
 0x2ec   :  { %1109 = vst [vmem:[#allocation2 + $0x90] sm:$0xff] %v996_v28 }
 0x2ed   :  { %1110 = vst [vmem:[#allocation2 + $0x98] sm:$0xff] %v998_v30  ;;  %v1001_v31 = vpop.f32.mrb[30].mxu0 }
 0x2ee   :  { %v1002_v32 = vadd.f32 %v1001_v31, %v711_v6  ;;  %v1003_v33 = vpop.f32.mrb[31].mxu0 }
 0x2ef   :  { %v1004_v34 = vadd.f32 %v1003_v33, %v715_v10 }
 0x2f0   :  { %1116 = vst [vmem:[#allocation2 + $0xc8] sm:$0xff] %v1002_v32 }
 0x2f1   :  { %1117 = vst [vmem:[#allocation2 + $0xd0] sm:$0xff] %v1004_v34 }
 0x2f2   :  { %1572 = shalt.err (!%p1569_p4)
}
 0x2f3   :  { %s1573_s23 = scalar_lea.hbm %s2267_s7, 3584 }
 0x2f4   :  { %p1574_p5 = scmp.ne.s32.totalorder %s2267_s7, %s1573_s23  ;;  %p1577_p6 = scmp.lt.u32.totalorder %s1573_s23, %s2267_s7 }
 0x2f6   :  { %p1579_p7 = pnand %p1577_p6, %p1574_p5 }
 0x2f8   :  { %1582 = shalt.err (!%p1579_p7)
}
 0x2f9   :  { %s1587_s28 = smov 896   ;;  %s1588_s29 = smov 56  }
 0x2fa   :  { %1130 = dma.vmem_to_hbm [thread:$0]  %s1125_s20, 3584, %s2267_s7, [#allocation3], %s1587_s28, %s1587_s28, %s1588_s29  }
 0x2fb   :  { %1583 = dma.done.wait [#allocation3], 3584  }
 0x2fc   :  { %1584 = vsyncadd [#allocation3], 4294963712 }
 0x2fd   :  { %1134 = vsyncpa [#allocation3], 1 }

</bundles_post_ra>
